<compile_context>
chip_gen: v7x
topology: tpu7x:2x2x1
jax: 0.10.0
libtpu: 0.0.40
codegen_flags: <defaults>
</compile_context>

<pallas_src>
import functools

import jax
import jax.numpy as jnp
from jax.experimental import pallas as pl
from jax.experimental.pallas import tpu as pltpu

EPS = 1e-5
LANE = 128


def _round_up(x, m):
    return (x + m - 1) // m * m


def _vmem_capacity_bytes():
    try:
        return int(pltpu.get_tpu_info().vmem_capacity_bytes)
    except Exception:
        return 64 * 1024 * 1024  # conservative (v7x) fallback


VMEM_CAP = _vmem_capacity_bytes()
VMEM_LIMIT = VMEM_CAP * 3 // 4            # 48 MiB on v7x, 96 MiB on v5e/v6e
PASS1_TILE_CAP = 1024 if VMEM_CAP >= 100 * 1024 * 1024 else 512
PASS2_TILE_CAP = 2048


# ----------------------------------------------------------------------------
# Kernels
# ----------------------------------------------------------------------------
def conv_stats_kernel(p_ref, w_ref, z_ref, stats_ref):
    """Pass 1: conv tile (im2col GEMM, f32 acc) -> bf16 z + per-tile partial stats."""
    z = jnp.dot(p_ref[...], w_ref[...], preferred_element_type=jnp.float32)
    z_ref[...] = z.astype(z_ref.dtype)                     # bf16 store (HBM traffic /2)
    # Per-channel partial sums ride VPU/XLU slack under the MXU GEMM; each grid
    # step owns its own (8, c_pad) stats block, so pass 1 is megacore-parallel.
    s0 = jnp.sum(z, axis=0, keepdims=True)
    s1 = jnp.sum(z * z, axis=0, keepdims=True)
    row = jax.lax.broadcasted_iota(jnp.int32, (8, z.shape[1]), 0)
    stats_ref[...] = jnp.where(row == 0, s0, jnp.where(row == 1, s1, 0.0))


def bn_relu_kernel(z_ref, scale_ref, shift_ref, y_ref):
    """Pass 2 (block 1): y = relu(scale * z + shift), emitted in bf16."""
    y = z_ref[...].astype(jnp.float32) * scale_ref[...] + shift_ref[...]
    y_ref[...] = jnp.maximum(y, 0.0).astype(y_ref.dtype)


def bn_skip1x1_relu_kernel(z_ref, scale_ref, shift_ref, xs_ref, w3_ref, o_ref):
    """Pass 2 (block 2, 1x1-conv skip fused): relu(scale*z + shift + xs@w3).

    b3 is folded into shift on the host.
    """
    y = z_ref[...].astype(jnp.float32) * scale_ref[...] + shift_ref[...]
    skip = jnp.dot(xs_ref[...], w3_ref[...], preferred_element_type=jnp.float32)
    o_ref[...] = jnp.maximum(y + skip, 0.0).astype(o_ref.dtype)


def bn_add_relu_kernel(z_ref, scale_ref, shift_ref, xs_ref, o_ref):
    """Pass 2 (block 2, identity skip): relu(scale*z + shift + xs)."""
    y = z_ref[...].astype(jnp.float32) * scale_ref[...] + shift_ref[...]
    o_ref[...] = jnp.maximum(y + xs_ref[...].astype(jnp.float32),
                             0.0).astype(o_ref.dtype)


# ----------------------------------------------------------------------------
# pallas_call builders
# ----------------------------------------------------------------------------
def _row_spec(tile_m, width):
    return pl.BlockSpec((tile_m, width), lambda i: (i, 0))


def _full_spec(shape):
    return pl.BlockSpec(shape, lambda i: (0, 0))


def _conv_gemm_pass(patches, wmat, tile_m):
    m_pad, k_pad = patches.shape
    c_pad = wmat.shape[1]
    num_tiles = m_pad // tile_m
    cost = pl.CostEstimate(
        flops=2 * m_pad * k_pad * c_pad,
        transcendentals=0,
        bytes_accessed=int(patches.size * 2 + wmat.size * 2
                           + m_pad * c_pad * 2 + num_tiles * 8 * c_pad * 4))
    return pl.pallas_call(
        conv_stats_kernel,
        out_shape=(jax.ShapeDtypeStruct((m_pad, c_pad), jnp.bfloat16),
                   jax.ShapeDtypeStruct((num_tiles * 8, c_pad), jnp.float32)),
        grid_spec=pltpu.PrefetchScalarGridSpec(
            num_scalar_prefetch=0,
            grid=(num_tiles,),
            in_specs=[_row_spec(tile_m, k_pad),
                      _full_spec((k_pad, c_pad))],
            out_specs=[_row_spec(tile_m, c_pad),
                       pl.BlockSpec((8, c_pad), lambda i: (i, 0))]),
        compiler_params=pltpu.CompilerParams(
            dimension_semantics=("parallel",),   # per-tile stats -> megacore-shardable
            vmem_limit_bytes=VMEM_LIMIT),
        cost_estimate=cost,
    )(patches, wmat)


def _bn_relu_pass(z, scale, shift, tile_m):
    m_pad, c_pad = z.shape
    grid = (m_pad // tile_m,)
    cost = pl.CostEstimate(flops=3 * m_pad * c_pad, transcendentals=0,
                           bytes_accessed=int(m_pad * c_pad * 4 + 2 * c_pad * 4))
    return pl.pallas_call(
        bn_relu_kernel,
        out_shape=jax.ShapeDtypeStruct((m_pad, c_pad), jnp.bfloat16),
        grid_spec=pltpu.PrefetchScalarGridSpec(
            num_scalar_prefetch=0, grid=grid,
            in_specs=[_row_spec(tile_m, c_pad),
                      _full_spec((1, c_pad)),
                      _full_spec((1, c_pad))],
            out_specs=_row_spec(tile_m, c_pad)),
        compiler_params=pltpu.CompilerParams(
            dimension_semantics=("parallel",),
            vmem_limit_bytes=VMEM_LIMIT),
        cost_estimate=cost,
    )(z, scale, shift)


def _bn_skip1x1_relu_pass(z, scale, shift, xs, w3, tile_m):
    m_pad, c_pad = z.shape
    cin_p = xs.shape[1]
    grid = (m_pad // tile_m,)
    cost = pl.CostEstimate(
        flops=2 * m_pad * cin_p * c_pad + 4 * m_pad * c_pad,
        transcendentals=0,
        bytes_accessed=int(m_pad * c_pad * 4 + m_pad * cin_p * 2
                           + cin_p * c_pad * 2 + 2 * c_pad * 4))
    return pl.pallas_call(
        bn_skip1x1_relu_kernel,
        out_shape=jax.ShapeDtypeStruct((m_pad, c_pad), jnp.bfloat16),
        grid_spec=pltpu.PrefetchScalarGridSpec(
            num_scalar_prefetch=0, grid=grid,
            in_specs=[_row_spec(tile_m, c_pad),
                      _full_spec((1, c_pad)),
                      _full_spec((1, c_pad)),
                      _row_spec(tile_m, cin_p),
                      _full_spec((cin_p, c_pad))],
            out_specs=_row_spec(tile_m, c_pad)),
        compiler_params=pltpu.CompilerParams(
            dimension_semantics=("parallel",),
            vmem_limit_bytes=VMEM_LIMIT),
        cost_estimate=cost,
    )(z, scale, shift, xs, w3)


def _bn_add_relu_pass(z, scale, shift, xs, tile_m):
    m_pad, c_pad = z.shape
    grid = (m_pad // tile_m,)
    cost = pl.CostEstimate(flops=4 * m_pad * c_pad, transcendentals=0,
                           bytes_accessed=int(m_pad * c_pad * 6 + 2 * c_pad * 4))
    return pl.pallas_call(
        bn_add_relu_kernel,
        out_shape=jax.ShapeDtypeStruct((m_pad, c_pad), jnp.bfloat16),
        grid_spec=pltpu.PrefetchScalarGridSpec(
            num_scalar_prefetch=0, grid=grid,
            in_specs=[_row_spec(tile_m, c_pad),
                      _full_spec((1, c_pad)),
                      _full_spec((1, c_pad)),
                      _row_spec(tile_m, c_pad)],
            out_specs=_row_spec(tile_m, c_pad)),
        compiler_params=pltpu.CompilerParams(
            dimension_semantics=("parallel",),
            vmem_limit_bytes=VMEM_LIMIT),
        cost_estimate=cost,
    )(z, scale, shift, xs)


# ----------------------------------------------------------------------------
# Host-side glue (layout / padding / tile selection only)
# ----------------------------------------------------------------------------
def _pick_pass1_tile(m, k_pad, c_pad):
    """Largest row tile that keeps double-buffered operands within the VMEM budget."""
    tile = min(PASS1_TILE_CAP, _round_up(m, 8))
    w_bytes = 2 * k_pad * c_pad * 2                      # resident bf16 weights, 2 bufs
    while tile > 8:
        t_bytes = 2 * tile * (k_pad + c_pad) * 2 + 2 * 8 * c_pad * 4
        if w_bytes + t_bytes <= VMEM_LIMIT * 8 // 10:
            break
        tile = max(8, _round_up(tile // 2, 8))
    return tile


def _pick_pass2_tile(m_pad, tile_m1, c_pad):
    """Largest multiple of tile_m1 dividing m_pad, capped by VMEM / PASS2_TILE_CAP."""
    max_rows = max(tile_m1, VMEM_LIMIT // (c_pad * 2 * 10))
    target = min(PASS2_TILE_CAP, max_rows)
    k = m_pad // tile_m1
    best = 1
    for d in range(1, k + 1):
        if k % d == 0 and d * tile_m1 <= target:
            best = d
    return best * tile_m1


def _im2col_3x3(x_nhwc, stride, m_pad, k_pad):
    """im2col for a 3x3 conv with padding=1 -> (m_pad, k_pad) bf16."""
    n, h, w, c = x_nhwc.shape
    ho = (h - 1) // stride + 1
    wo = (w - 1) // stride + 1
    xp = jnp.pad(x_nhwc, ((0, 0), (1, 1), (1, 1), (0, 0)))
    cols = []
    for kh in range(3):
        for kw in range(3):
            cols.append(xp[:, kh:kh + (ho - 1) * stride + 1:stride,
                           kw:kw + (wo - 1) * stride + 1:stride, :])
    p = jnp.stack(cols, axis=3).reshape(n * ho * wo, 9 * c)
    p = jnp.pad(p, ((0, m_pad - n * ho * wo), (0, k_pad - 9 * c)))
    return p.astype(jnp.bfloat16)


def _flatten_w3x3(w_oihw, k_pad, c_pad):
    """(Cout, Cin, 3, 3) -> (k_pad, c_pad) bf16, ordered (kh, kw, cin)."""
    cout, cin, _, _ = w_oihw.shape
    wf = jnp.transpose(w_oihw, (2, 3, 1, 0)).reshape(9 * cin, cout)
    wf = jnp.pad(wf, ((0, k_pad - 9 * cin), (0, c_pad - cout)))
    return wf.astype(jnp.bfloat16)


def _bn_scale_shift(stats, gamma, beta, count, c_pad, extra_shift=None):
    """Reduce per-tile partials; scale = g*rsqrt(var+eps), shift = b - mu*scale."""
    st = stats.reshape(-1, 8, c_pad)
    s0 = jnp.sum(st[:, 0, :], axis=0)
    s1 = jnp.sum(st[:, 1, :], axis=0)
    mean = s0 / count
    var = s1 / count - mean * mean
    g = jnp.pad(gamma.astype(jnp.float32), (0, c_pad - gamma.shape[0]))
    b = jnp.pad(beta.astype(jnp.float32), (0, c_pad - beta.shape[0]))
    scale = g * jax.lax.rsqrt(var + EPS)
    shift = b - mean * scale
    if extra_shift is not None:
        shift = shift + extra_shift
    return scale.reshape(1, c_pad), shift.reshape(1, c_pad)


@functools.partial(jax.jit, static_argnames=("strides", "use_1x1conv"))
def residual_forward(x_nchw, params, *, strides=1, use_1x1conv=False):
    """Pallas implementation of Residual.forward (training-mode BN)."""
    x = jnp.transpose(x_nchw, (0, 2, 3, 1)).astype(jnp.float32)   # NHWC
    n, h, w, cin = x.shape
    cout = params["w1"].shape[0]

    ho = (h - 1) // strides + 1
    wo = (w - 1) // strides + 1
    m = n * ho * wo

    c_pad = _round_up(cout, LANE)
    k1 = _round_up(9 * cin, LANE)
    k2 = _round_up(9 * cout, LANE)

    tile_m1 = _pick_pass1_tile(m, max(k1, k2), c_pad)   # GEMM passes
    m_pad = _round_up(m, tile_m1)
    tile_m2 = _pick_pass2_tile(m_pad, tile_m1, c_pad)   # streaming passes

    # ---- conv1 (3x3, stride=strides, pad=1) + bn1 + relu --------------------
    # b1/b2 are intentionally NOT applied: a bias added immediately before
    # training-mode BatchNorm is cancelled by the mean subtraction.
    p1 = _im2col_3x3(x, strides, m_pad, k1)
    z1, st1 = _conv_gemm_pass(p1, _flatten_w3x3(params["w1"], k1, c_pad), tile_m1)
    scale1, shift1 = _bn_scale_shift(st1, params["g1"], params["beta1"], m, c_pad)
    y1 = _bn_relu_pass(z1, scale1, shift1, tile_m2)                # bf16
    y1_nhwc = y1[:m, :cout].reshape(n, ho, wo, cout)

    # ---- conv2 (3x3, stride=1, pad=1) + bn2 + skip + relu -------------------
    p2 = _im2col_3x3(y1_nhwc, 1, m_pad, k2)
    z2, st2 = _conv_gemm_pass(p2, _flatten_w3x3(params["w2"], k2, c_pad), tile_m1)

    if use_1x1conv:
        cin_p = _round_up(cin, LANE)
        b3_pad = jnp.pad(params["b3"].astype(jnp.float32), (0, c_pad - cout))
        scale2, shift2 = _bn_scale_shift(st2, params["g2"], params["beta2"], m,
                                         c_pad, extra_shift=b3_pad)
        xs = x[:, ::strides, ::strides, :].reshape(m, cin)
        xs = jnp.pad(xs, ((0, m_pad - m), (0, cin_p - cin))).astype(jnp.bfloat16)
        w3 = jnp.transpose(params["w3"].reshape(cout, cin))
        w3 = jnp.pad(w3, ((0, cin_p - cin), (0, c_pad - cout))).astype(jnp.bfloat16)
        out = _bn_skip1x1_relu_pass(z2, scale2, shift2, xs, w3, tile_m2)
    else:
        # Identity skip: requires cin == cout and strides == 1 (as in PyTorch).
        assert cin == cout and strides == 1
        scale2, shift2 = _bn_scale_shift(st2, params["g2"], params["beta2"], m, c_pad)
        xs = jnp.pad(x.reshape(m, cin),
                     ((0, m_pad - m), (0, c_pad - cin))).astype(jnp.bfloat16)
        out = _bn_add_relu_pass(z2, scale2, shift2, xs, tile_m2)

    out = out[:m, :cout].astype(jnp.float32).reshape(n, ho, wo, cout)
    return jnp.transpose(out, (0, 3, 1, 2))                       # back to NCHW


# ---------------- pure-JAX reference (correctness check) ---------------------
def _conv2d_ref(x_nchw, w, b, stride, pad):
    out = jax.lax.conv_general_dilated(
        x_nchw, w, (stride, stride), [(pad, pad), (pad, pad)],
        dimension_numbers=("NCHW", "OIHW", "NCHW"))
    return out + b.reshape(1, -1, 1, 1)


def _bn_ref(y, g, beta):
    mu = y.mean(axis=(0, 2, 3), keepdims=True)
    var = ((y - mu) ** 2).mean(axis=(0, 2, 3), keepdims=True)
    return (g.reshape(1, -1, 1, 1) * (y - mu) / jnp.sqrt(var + EPS)
            + beta.reshape(1, -1, 1, 1))


def residual_ref(x, p, strides=1, use_1x1conv=False):
    y = jax.nn.relu(_bn_ref(_conv2d_ref(x, p["w1"], p["b1"], strides, 1),
                            p["g1"], p["beta1"]))
    y = _bn_ref(_conv2d_ref(y, p["w2"], p["b2"], 1, 1), p["g2"], p["beta2"])
    skip = _conv2d_ref(x, p["w3"], p["b3"], strides, 0) if use_1x1conv else x
    return jax.nn.relu(y + skip)


def _make_params(key, cin, cout, use_1x1conv):
    ks = jax.random.split(key, 10)
    p = {
        "w1": jax.random.normal(ks[0], (cout, cin, 3, 3), jnp.float32) * 0.1,
        "b1": jax.random.normal(ks[1], (cout,), jnp.float32) * 0.1,
        "w2": jax.random.normal(ks[2], (cout, cout, 3, 3), jnp.float32) * 0.1,
        "b2": jax.random.normal(ks[3], (cout,), jnp.float32) * 0.1,
        "g1": jax.random.uniform(ks[4], (cout,), jnp.float32, 0.5, 1.5),
        "beta1": jax.random.normal(ks[5], (cout,), jnp.float32) * 0.1,
        "g2": jax.random.uniform(ks[6], (cout,), jnp.float32, 0.5, 1.5),
        "beta2": jax.random.normal(ks[7], (cout,), jnp.float32) * 0.1,
    }
    if use_1x1conv:
        p["w3"] = jax.random.normal(ks[8], (cout, cin, 1, 1), jnp.float32) * 0.1
        p["b3"] = jax.random.normal(ks[9], (cout,), jnp.float32) * 0.1
    return p


if __name__ == "__main__":
    key = jax.random.PRNGKey(0)
    k_x1, k_p1, k_x2, k_p2 = jax.random.split(key, 4)

    # Test 1: Residual(4, 8, use_1x1conv=True, strides=2) on x of (2, 4, 16, 16).
    cin, cout, strides = 4, 8, 2
    x1 = jax.random.uniform(k_x1, (2, cin, 16, 16), jnp.float32)
    p1 = _make_params(k_p1, cin, cout, use_1x1conv=True)
    out1 = jax.block_until_ready(
        residual_forward(x1, p1, strides=strides, use_1x1conv=True))
    ref1 = jax.block_until_ready(
        residual_ref(x1, p1, strides=strides, use_1x1conv=True))
    assert out1.shape == (2, cout, 8, 8), out1.shape
    # Tolerance sized for bf16 MXU inputs / bf16 z propagated through two BatchNorms.
    assert jnp.allclose(out1, ref1, atol=5e-2, rtol=5e-2), \
        float(jnp.abs(out1 - ref1).max())

    # Test 2: identity-skip path, Residual(8, 8) on x of (2, 8, 8, 8).
    x2 = jax.random.uniform(k_x2, (2, 8, 8, 8), jnp.float32)
    p2 = _make_params(k_p2, 8, 8, use_1x1conv=False)
    out2 = jax.block_until_ready(
        residual_forward(x2, p2, strides=1, use_1x1conv=False))
    ref2 = jax.block_until_ready(
        residual_ref(x2, p2, strides=1, use_1x1conv=False))
    assert out2.shape == (2, 8, 8, 8), out2.shape
    assert jnp.allclose(out2, ref2, atol=5e-2, rtol=5e-2), \
        float(jnp.abs(out2 - ref2).max())

    print("KERNEL_OK")
</pallas_src>

<mosaic_0001>
module attributes {stable_mosaic.version = 11 : i64} {
  func.func @conv_stats_kernel(%arg0: i32, %arg1: memref<128x128xbf16, #tpu.memory_space<vmem>>, %arg2: memref<128x128xbf16, #tpu.memory_space<vmem>>, %arg3: memref<128x128xbf16, #tpu.memory_space<vmem>>, %arg4: memref<8x128xf32, #tpu.memory_space<vmem>>) attributes {dimension_semantics = [#tpu.dimension_semantics<parallel>], iteration_bounds = array<i64: 1>, scalar_prefetch = 0 : i64, scratch_operands = 0 : i64, tpu.core_type = #tpu.core_type<tc>, window_params = [{transform_indices = @transform_0, window_bounds = array<i64: 128, 128>}, {pipeline_mode = #tpu.pipeline_mode<synchronous>, transform_indices = @transform_1, window_bounds = array<i64: 128, 128>}, {transform_indices = @transform_2, window_bounds = array<i64: 128, 128>}, {transform_indices = @transform_3, window_bounds = array<i64: 8, 128>}]} {
    %c0 = arith.constant 0 : index
    %c0_0 = arith.constant 0 : index
    %0 = vector.load %arg1[%c0, %c0_0] : memref<128x128xbf16, #tpu.memory_space<vmem>>, vector<128x128xbf16>
    %c0_1 = arith.constant 0 : index
    %c0_2 = arith.constant 0 : index
    %1 = vector.load %arg2[%c0_1, %c0_2] : memref<128x128xbf16, #tpu.memory_space<vmem>>, vector<128x128xbf16>
    %cst = arith.constant dense<0.000000e+00> : vector<128x128xf32>
    %2 = tpu.matmul %0, %1, %cst {dimension_numbers = #tpu.dot_dimension_numbers<[1], [0], [0], [1], [0, 0, 1, 1], [], []>} : vector<128x128xbf16>, vector<128x128xbf16>, vector<128x128xf32> -> vector<128x128xf32>
    %3 = arith.truncf %2 : vector<128x128xf32> to vector<128x128xbf16>
    %c0_3 = arith.constant 0 : index
    %c0_4 = arith.constant 0 : index
    %4 = vector.load %arg3[%c0_3, %c0_4] : memref<128x128xbf16, #tpu.memory_space<vmem>>, vector<128x128xbf16>
    tpu.vector_store %arg3[%c0_3, %c0_4], %3 {strides = array<i32>} : memref<128x128xbf16, #tpu.memory_space<vmem>>, vector<128x128xbf16>,
    %cst_5 = arith.constant dense<0.000000e+00> : vector<128xf32>
    %5 = vector.multi_reduction <add>, %2, %cst_5 [0] : vector<128x128xf32> to vector<128xf32>
    %6 = vector.shape_cast %5 : vector<128xf32> to vector<1x128xf32>
    %7 = arith.mulf %2, %2 : vector<128x128xf32>
    %cst_6 = arith.constant dense<0.000000e+00> : vector<128xf32>
    %8 = vector.multi_reduction <add>, %7, %cst_6 [0] : vector<128x128xf32> to vector<128xf32>
    %9 = vector.shape_cast %8 : vector<128xf32> to vector<1x128xf32>
    %10 = tpu.iota {dimensions = array<i32: 0>} : vector<8x128xi32>
    %c0_i32 = arith.constant 0 : i32
    %11 = vector.broadcast %c0_i32 : i32 to vector<8x128xi32>
    %12 = arith.cmpi eq, %10, %11 : vector<8x128xi32>
    %c1_i32 = arith.constant 1 : i32
    %13 = vector.broadcast %c1_i32 : i32 to vector<8x128xi32>
    %14 = arith.cmpi eq, %10, %13 : vector<8x128xi32>
    %cst_7 = arith.constant 0.000000e+00 : f32
    %15 = vector.shape_cast %9 : vector<1x128xf32> to vector<1x128xf32>
    %16 = vector.broadcast %15 : vector<1x128xf32> to vector<8x128xf32>
    %17 = vector.broadcast %cst_7 : f32 to vector<8x128xf32>
    %18 = arith.select %14, %16, %17 : vector<8x128xi1>, vector<8x128xf32>
    %19 = vector.shape_cast %6 : vector<1x128xf32> to vector<1x128xf32>
    %20 = vector.broadcast %19 : vector<1x128xf32> to vector<8x128xf32>
    %21 = arith.select %12, %20, %18 : vector<8x128xi1>, vector<8x128xf32>
    %c0_8 = arith.constant 0 : index
    %c0_9 = arith.constant 0 : index
    %22 = vector.load %arg4[%c0_8, %c0_9] : memref<8x128xf32, #tpu.memory_space<vmem>>, vector<8x128xf32>
    tpu.vector_store %arg4[%c0_8, %c0_9], %21 {strides = array<i32>} : memref<8x128xf32, #tpu.memory_space<vmem>>, vector<8x128xf32>,
    return
  }
  func.func @transform_0(%arg0: i32) -> (i32, i32) {
    %c0_i32 = arith.constant 0 : i32
    %c0_i32_0 = arith.constant 0 : i32
    return %arg0, %c0_i32 : i32, i32
  }
  func.func @transform_1(%arg0: i32) -> (i32, i32) {
    %c0_i32 = arith.constant 0 : i32
    %c0_i32_0 = arith.constant 0 : i32
    %c0_i32_1 = arith.constant 0 : i32
    return %c0_i32, %c0_i32_0 : i32, i32
  }
  func.func @transform_2(%arg0: i32) -> (i32, i32) {
    %c0_i32 = arith.constant 0 : i32
    %c0_i32_0 = arith.constant 0 : i32
    return %arg0, %c0_i32 : i32, i32
  }
  func.func @transform_3(%arg0: i32) -> (i32, i32) {
    %c0_i32 = arith.constant 0 : i32
    %c0_i32_0 = arith.constant 0 : i32
    return %arg0, %c0_i32 : i32, i32
  }
}

module attributes {stable_mosaic.version = 11 : i64} {
  func.func @bn_relu_kernel(%arg0: i32, %arg1: memref<128x128xbf16, #tpu.memory_space<vmem>>, %arg2: memref<1x128xf32, #tpu.memory_space<vmem>>, %arg3: memref<1x128xf32, #tpu.memory_space<vmem>>, %arg4: memref<128x128xbf16, #tpu.memory_space<vmem>>) attributes {dimension_semantics = [#tpu.dimension_semantics<parallel>], iteration_bounds = array<i64: 1>, scalar_prefetch = 0 : i64, scratch_operands = 0 : i64, tpu.core_type = #tpu.core_type<tc>, window_params = [{transform_indices = @transform_0, window_bounds = array<i64: 128, 128>}, {pipeline_mode = #tpu.pipeline_mode<synchronous>, transform_indices = @transform_1, window_bounds = array<i64: 1, 128>}, {pipeline_mode = #tpu.pipeline_mode<synchronous>, transform_indices = @transform_2, window_bounds = array<i64: 1, 128>}, {transform_indices = @transform_3, window_bounds = array<i64: 128, 128>}]} {
    %c0 = arith.constant 0 : index
    %c0_0 = arith.constant 0 : index
    %0 = vector.load %arg1[%c0, %c0_0] : memref<128x128xbf16, #tpu.memory_space<vmem>>, vector<128x128xbf16>
    %1 = arith.extf %0 : vector<128x128xbf16> to vector<128x128xf32>
    %c0_1 = arith.constant 0 : index
    %c0_2 = arith.constant 0 : index
    %2 = vector.load %arg2[%c0_1, %c0_2] : memref<1x128xf32, #tpu.memory_space<vmem>>, vector<1x128xf32>
    %3 = vector.broadcast %2 : vector<1x128xf32> to vector<128x128xf32>
    %4 = arith.mulf %1, %3 : vector<128x128xf32>
    %c0_3 = arith.constant 0 : index
    %c0_4 = arith.constant 0 : index
    %5 = vector.load %arg3[%c0_3, %c0_4] : memref<1x128xf32, #tpu.memory_space<vmem>>, vector<1x128xf32>
    %6 = vector.broadcast %5 : vector<1x128xf32> to vector<128x128xf32>
    %7 = arith.addf %4, %6 : vector<128x128xf32>
    %cst = arith.constant 0.000000e+00 : f32
    %8 = vector.broadcast %cst : f32 to vector<128x128xf32>
    %9 = arith.maximumf %7, %8 : vector<128x128xf32>
    %10 = arith.truncf %9 : vector<128x128xf32> to vector<128x128xbf16>
    %c0_5 = arith.constant 0 : index
    %c0_6 = arith.constant 0 : index
    %11 = vector.load %arg4[%c0_5, %c0_6] : memref<128x128xbf16, #tpu.memory_space<vmem>>, vector<128x128xbf16>
    tpu.vector_store %arg4[%c0_5, %c0_6], %10 {strides = array<i32>} : memref<128x128xbf16, #tpu.memory_space<vmem>>, vector<128x128xbf16>,
    return
  }
  func.func @transform_0(%arg0: i32) -> (i32, i32) {
    %c0_i32 = arith.constant 0 : i32
    %c0_i32_0 = arith.constant 0 : i32
    return %arg0, %c0_i32 : i32, i32
  }
  func.func @transform_1(%arg0: i32) -> (i32, i32) {
    %c0_i32 = arith.constant 0 : i32
    %c0_i32_0 = arith.constant 0 : i32
    %c0_i32_1 = arith.constant 0 : i32
    return %c0_i32, %c0_i32_0 : i32, i32
  }
  func.func @transform_2(%arg0: i32) -> (i32, i32) {
    %c0_i32 = arith.constant 0 : i32
    %c0_i32_0 = arith.constant 0 : i32
    %c0_i32_1 = arith.constant 0 : i32
    return %c0_i32, %c0_i32_0 : i32, i32
  }
  func.func @transform_3(%arg0: i32) -> (i32, i32) {
    %c0_i32 = arith.constant 0 : i32
    %c0_i32_0 = arith.constant 0 : i32
    return %arg0, %c0_i32 : i32, i32
  }
}

module attributes {stable_mosaic.version = 11 : i64} {
  func.func @bn_skip1x1_relu_kernel(%arg0: i32, %arg1: memref<128x128xbf16, #tpu.memory_space<vmem>>, %arg2: memref<1x128xf32, #tpu.memory_space<vmem>>, %arg3: memref<1x128xf32, #tpu.memory_space<vmem>>, %arg4: memref<128x128xbf16, #tpu.memory_space<vmem>>, %arg5: memref<128x128xbf16, #tpu.memory_space<vmem>>, %arg6: memref<128x128xbf16, #tpu.memory_space<vmem>>) attributes {dimension_semantics = [#tpu.dimension_semantics<parallel>], iteration_bounds = array<i64: 1>, scalar_prefetch = 0 : i64, scratch_operands = 0 : i64, tpu.core_type = #tpu.core_type<tc>, window_params = [{transform_indices = @transform_0, window_bounds = array<i64: 128, 128>}, {pipeline_mode = #tpu.pipeline_mode<synchronous>, transform_indices = @transform_1, window_bounds = array<i64: 1, 128>}, {pipeline_mode = #tpu.pipeline_mode<synchronous>, transform_indices = @transform_2, window_bounds = array<i64: 1, 128>}, {transform_indices = @transform_3, window_bounds = array<i64: 128, 128>}, {pipeline_mode = #tpu.pipeline_mode<synchronous>, transform_indices = @transform_4, window_bounds = array<i64: 128, 128>}, {transform_indices = @transform_5, window_bounds = array<i64: 128, 128>}]} {
    %c0 = arith.constant 0 : index
    %c0_0 = arith.constant 0 : index
    %0 = vector.load %arg1[%c0, %c0_0] : memref<128x128xbf16, #tpu.memory_space<vmem>>, vector<128x128xbf16>
    %1 = arith.extf %0 : vector<128x128xbf16> to vector<128x128xf32>
    %c0_1 = arith.constant 0 : index
    %c0_2 = arith.constant 0 : index
    %2 = vector.load %arg2[%c0_1, %c0_2] : memref<1x128xf32, #tpu.memory_space<vmem>>, vector<1x128xf32>
    %3 = vector.broadcast %2 : vector<1x128xf32> to vector<128x128xf32>
    %4 = arith.mulf %1, %3 : vector<128x128xf32>
    %c0_3 = arith.constant 0 : index
    %c0_4 = arith.constant 0 : index
    %5 = vector.load %arg3[%c0_3, %c0_4] : memref<1x128xf32, #tpu.memory_space<vmem>>, vector<1x128xf32>
    %6 = vector.broadcast %5 : vector<1x128xf32> to vector<128x128xf32>
    %7 = arith.addf %4, %6 : vector<128x128xf32>
    %c0_5 = arith.constant 0 : index
    %c0_6 = arith.constant 0 : index
    %8 = vector.load %arg4[%c0_5, %c0_6] : memref<128x128xbf16, #tpu.memory_space<vmem>>, vector<128x128xbf16>
    %c0_7 = arith.constant 0 : index
    %c0_8 = arith.constant 0 : index
    %9 = vector.load %arg5[%c0_7, %c0_8] : memref<128x128xbf16, #tpu.memory_space<vmem>>, vector<128x128xbf16>
    %cst = arith.constant dense<0.000000e+00> : vector<128x128xf32>
    %10 = tpu.matmul %8, %9, %cst {dimension_numbers = #tpu.dot_dimension_numbers<[1], [0], [0], [1], [0, 0, 1, 1], [], []>} : vector<128x128xbf16>, vector<128x128xbf16>, vector<128x128xf32> -> vector<128x128xf32>
    %11 = arith.addf %7, %10 : vector<128x128xf32>
    %cst_9 = arith.constant 0.000000e+00 : f32
    %12 = vector.broadcast %cst_9 : f32 to vector<128x128xf32>
    %13 = arith.maximumf %11, %12 : vector<128x128xf32>
    %14 = arith.truncf %13 : vector<128x128xf32> to vector<128x128xbf16>
    %c0_10 = arith.constant 0 : index
    %c0_11 = arith.constant 0 : index
    %15 = vector.load %arg6[%c0_10, %c0_11] : memref<128x128xbf16, #tpu.memory_space<vmem>>, vector<128x128xbf16>
    tpu.vector_store %arg6[%c0_10, %c0_11], %14 {strides = array<i32>} : memref<128x128xbf16, #tpu.memory_space<vmem>>, vector<128x128xbf16>,
    return
  }
  func.func @transform_0(%arg0: i32) -> (i32, i32) {
    %c0_i32 = arith.constant 0 : i32
    %c0_i32_0 = arith.constant 0 : i32
    return %arg0, %c0_i32 : i32, i32
  }
  func.func @transform_1(%arg0: i32) -> (i32, i32) {
    %c0_i32 = arith.constant 0 : i32
    %c0_i32_0 = arith.constant 0 : i32
    %c0_i32_1 = arith.constant 0 : i32
    return %c0_i32, %c0_i32_0 : i32, i32
  }
  func.func @transform_2(%arg0: i32) -> (i32, i32) {
    %c0_i32 = arith.constant 0 : i32
    %c0_i32_0 = arith.constant 0 : i32
    %c0_i32_1 = arith.constant 0 : i32
    return %c0_i32, %c0_i32_0 : i32, i32
  }
  func.func @transform_3(%arg0: i32) -> (i32, i32) {
    %c0_i32 = arith.constant 0 : i32
    %c0_i32_0 = arith.constant 0 : i32
    return %arg0, %c0_i32 : i32, i32
  }
  func.func @transform_4(%arg0: i32) -> (i32, i32) {
    %c0_i32 = arith.constant 0 : i32
    %c0_i32_0 = arith.constant 0 : i32
    %c0_i32_1 = arith.constant 0 : i32
    return %c0_i32, %c0_i32_0 : i32, i32
  }
  func.func @transform_5(%arg0: i32) -> (i32, i32) {
    %c0_i32 = arith.constant 0 : i32
    %c0_i32_0 = arith.constant 0 : i32
    return %arg0, %c0_i32 : i32, i32
  }
}

</mosaic_0001>

<bundles_post_ra>
// kernel: residual_forward.5
= control target key start
LH: loop header
LB: loop body
LE: loop exit
PB: predicated region body
PF: predicated region fallthrough
CT: control target
= control target key end

     0   :  { %s422_s0 = inlined_call_operand.vmem [shape: bf16[128,128], index: 0, kind: input, shape index: {}]   ;;  %s423_s1 = inlined_call_operand.vmem [shape: f32[1,128], index: 1, kind: input, shape index: {}]   ;;  %s424_s2 = inlined_call_operand.vmem [shape: f32[1,128], index: 2, kind: input, shape index: {}]   ;;  %s425_s3 = inlined_call_operand.vmem [shape: bf16[128,128], index: 3, kind: output, shape index: {}]  }
   0x1   :  { %v227_v0 = vld [vmem:[%s422_s0] sm:$0xff]   ;;  %v298_v4 = vld [vmem:[%s422_s0 + $0x8] sm:$0xff]   ;;  %v299_v5 = vld [vmem:[%s422_s0 + $0x10] sm:$0xff]  }
   0x2   :  { %v338_v1 = vld [vmem:[%s423_s1] ss:$0 sm:$0xff]  ;;  %v228_v2 = vunpack.c.l.bf16 %v227_v0  ;;  %v229_v3 = vunpack.c.h.bf16 %v227_v0  ;;  %v300_v6 = vld [vmem:[%s422_s0 + $0x18] sm:$0xff]   ;;  %v232_v8 = vunpack.c.l.bf16 %v298_v4  ;;  %v233_v9 = vunpack.c.h.bf16 %v298_v4  ;;  %v302_v33 = vld [vmem:[%s422_s0 + $0x28] sm:$0xff]  }
   0x3   :  { %v352_v7 = vld [vmem:[%s424_s2] ss:$0 sm:$0xff]  ;;  %v236_v10 = vunpack.c.l.bf16 %v299_v5  ;;  %v237_v11 = vunpack.c.h.bf16 %v299_v5  ;;  %v240_v14 = vunpack.c.l.bf16 %v300_v6  ;;  %v241_v15 = vunpack.c.h.bf16 %v300_v6  ;;  %v303_v38 = vld [vmem:[%s422_s0 + $0x30] sm:$0xff]   ;;  %v304_v43 = vld [vmem:[%s422_s0 + $0x38] sm:$0xff]  }
   0x4   :  { %v53_v12 = vmul.f32 %v228_v2, %v338_v1  ;;  %v54_v13 = vmul.f32 %v229_v3, %v338_v1  ;;  %v55_v16 = vmul.f32 %v232_v8, %v338_v1  ;;  %v56_v17 = vmul.f32 %v233_v9, %v338_v1  ;;  %v301_v28 = vld [vmem:[%s422_s0 + $0x20] sm:$0xff]  }
   0x5   :  { %v57_v18 = vmul.f32 %v236_v10, %v338_v1  ;;  %v58_v19 = vmul.f32 %v237_v11, %v338_v1  ;;  %v59_v22 = vmul.f32 %v240_v14, %v338_v1  ;;  %v60_v23 = vmul.f32 %v241_v15, %v338_v1 }
   0x6   :  { %v76_v20 = vadd.f32 %v352_v7, %v53_v12  ;;  %v77_v21 = vadd.f32 %v352_v7, %v54_v13  ;;  %v78_v24 = vadd.f32 %v352_v7, %v55_v16  ;;  %v79_v25 = vadd.f32 %v352_v7, %v56_v17 }
   0x7   :  { %v80_v26 = vadd.f32 %v352_v7, %v57_v18  ;;  %v81_v27 = vadd.f32 %v352_v7, %v58_v19  ;;  %v82_v31 = vadd.f32 %v352_v7, %v59_v22  ;;  %v83_v32 = vadd.f32 %v352_v7, %v60_v23 }
   0x8   :  { %v92_v29 = vmax.f32 %v76_v20, 0.0  ;;  %v93_v30 = vmax.f32 %v77_v21, 0.0  ;;  %v94_v34 = vmax.f32 %v78_v24, 0.0  ;;  %v95_v35 = vmax.f32 %v79_v25, 0.0 }
   0x9   :  { %v96_v36 = vmax.f32 %v80_v26, 0.0  ;;  %v97_v37 = vmax.f32 %v81_v27, 0.0  ;;  %v98_v40 = vmax.f32 %v82_v31, 0.0  ;;  %v99_v41 = vmax.f32 %v83_v32, 0.0 }
   0xa   :  { %v261_v39 = vpack.c.bf16 %v93_v30, %v92_v29  ;;  %v244_v42 = vunpack.c.l.bf16 %v301_v28  ;;  %v266_v44 = vpack.c.bf16 %v95_v35, %v94_v34  ;;  %v245_v46 = vunpack.c.h.bf16 %v301_v28 }
   0xb   :  { %v271_v45 = vpack.c.bf16 %v97_v37, %v96_v36  ;;  %v248_v47 = vunpack.c.l.bf16 %v302_v33  ;;  %v276_v48 = vpack.c.bf16 %v99_v41, %v98_v40  ;;  %v249_v50 = vunpack.c.h.bf16 %v302_v33 }
   0xc   :  { %262 = vst [vmem:[%s425_s3] sm:$0xff] %v261_v39   ;;  %v61_v49 = vmul.f32 %v244_v42, %v338_v1  ;;  %v252_v51 = vunpack.c.l.bf16 %v303_v38  ;;  %305 = vst [vmem:[%s425_s3 + $0x8] sm:$0xff] %v266_v44   ;;  %v62_v52 = vmul.f32 %v245_v46, %v338_v1  ;;  %v253_v54 = vunpack.c.h.bf16 %v303_v38 }
   0xd   :  { %306 = vst [vmem:[%s425_s3 + $0x10] sm:$0xff] %v271_v45   ;;  %v63_v53 = vmul.f32 %v248_v47, %v338_v1  ;;  %v256_v55 = vunpack.c.l.bf16 %v304_v43  ;;  %307 = vst [vmem:[%s425_s3 + $0x18] sm:$0xff] %v276_v48   ;;  %v64_v57 = vmul.f32 %v249_v50, %v338_v1  ;;  %v257_v59 = vunpack.c.h.bf16 %v304_v43 }
   0xe   :  { %v84_v56 = vadd.f32 %v352_v7, %v61_v49  ;;  %v65_v58 = vmul.f32 %v252_v51, %v338_v1  ;;  %v85_v60 = vadd.f32 %v352_v7, %v62_v52  ;;  %v66_v62 = vmul.f32 %v253_v54, %v338_v1 }
   0xf   :  { %v86_v61 = vadd.f32 %v352_v7, %v63_v53  ;;  %v67_v63 = vmul.f32 %v256_v55, %v338_v1  ;;  %v87_v2 = vadd.f32 %v352_v7, %v64_v57  ;;  %v68_v4 = vmul.f32 %v257_v59, %v338_v1 }
  0x10   :  { %v100_v0 = vmax.f32 %v84_v56, 0.0  ;;  %v88_v3 = vadd.f32 %v352_v7, %v65_v58  ;;  %v101_v5 = vmax.f32 %v85_v60, 0.0  ;;  %v89_v8 = vadd.f32 %v352_v7, %v66_v62 }
  0x11   :  { %v102_v6 = vmax.f32 %v86_v61, 0.0  ;;  %v90_v9 = vadd.f32 %v352_v7, %v67_v63  ;;  %v103_v10 = vmax.f32 %v87_v2, 0.0  ;;  %v91_v12 = vadd.f32 %v352_v7, %v68_v4 }
  0x12   :  { %v104_v11 = vmax.f32 %v88_v3, 0.0  ;;  %v281_v13 = vpack.c.bf16 %v101_v5, %v100_v0  ;;  %v105_v14 = vmax.f32 %v89_v8, 0.0 }
  0x13   :  { %v106_v15 = vmax.f32 %v90_v9, 0.0  ;;  %v286_v16 = vpack.c.bf16 %v103_v10, %v102_v6  ;;  %v107_v17 = vmax.f32 %v91_v12, 0.0 }
  0x14   :  { %308 = vst [vmem:[%s425_s3 + $0x20] sm:$0xff] %v281_v13   ;;  %v291_v1 = vpack.c.bf16 %v105_v14, %v104_v11 }
  0x15   :  { %309 = vst [vmem:[%s425_s3 + $0x28] sm:$0xff] %v286_v16   ;;  %v296_v18 = vpack.c.bf16 %v107_v17, %v106_v15 }
  0x16   :  { %310 = vst [vmem:[%s425_s3 + $0x30] sm:$0xff] %v291_v1  }
  0x17   :  { %311 = vst [vmem:[%s425_s3 + $0x38] sm:$0xff] %v296_v18  }

// kernel: residual_forward.4
= control target key start
LH: loop header
LB: loop body
LE: loop exit
PB: predicated region body
PF: predicated region fallthrough
CT: control target
= control target key end

     0   :  { %s662_s1 = inlined_call_operand.vmem [shape: bf16[128,128], index: 1, kind: input, shape index: {}]   ;;  %s663_s0 = inlined_call_operand.vmem [shape: bf16[128,128], index: 0, kind: input, shape index: {}]   ;;  %s664_s2 = inlined_call_operand.vmem [shape: bf16[128,128], index: 2, kind: output, shape index: {0}]   ;;  %s665_s3 = inlined_call_operand.vmem [shape: f32[8,128], index: 3, kind: output, shape index: {1}]  }
   0x1   :  { %v551_v0 = vld [vmem:[%s662_s1] sm:$0xff]   ;;  %v552_v1 = vld [vmem:[%s662_s1 + $0x8] sm:$0xff]   ;;  %v553_v2 = vld [vmem:[%s662_s1 + $0x10] sm:$0xff]  }
   0x2   :  { %503 = vmatprep.subr.bf16.mxu0 %v551_v0  ;;  %535 = vmatprep.subr.bf16.mxu1 %v551_v0  ;;  %v554_v3 = vld [vmem:[%s662_s1 + $0x18] sm:$0xff]   ;;  %v559_v4 = vld [vmem:[%s663_s0] sm:$0xff]   ;;  %v556_v7 = vld [vmem:[%s662_s1 + $0x28] sm:$0xff]  }
   0x3   :  { %504 = vmatpush3.bf16.msra.mxu0 %v551_v0  ;;  %543 = vmatpush3.bf16.msra.mxu1 %v551_v0  ;;  %v555_v5 = vld [vmem:[%s662_s1 + $0x20] sm:$0xff]   ;;  %v557_v8 = vld [vmem:[%s662_s1 + $0x30] sm:$0xff]   ;;  %v558_v9 = vld [vmem:[%s662_s1 + $0x38] sm:$0xff]  }
   0x4   :  { %505 = vmatprep.subr.bf16.mxu0 %v552_v1  ;;  %536 = vmatprep.subr.bf16.mxu1 %v552_v1  ;;  %v563_v6 = vld [vmem:[%s663_s0 + $0x20] sm:$0xff]   ;;  %v560_v10 = vld [vmem:[%s663_s0 + $0x8] sm:$0xff]   ;;  %v561_v12 = vld [vmem:[%s663_s0 + $0x10] sm:$0xff]  }
   0x5   :  { %519 = vmatprep.mubr.bf16.mxu0 %v559_v4  ;;  %527 = vmatprep.mubr.bf16.mxu1 %v563_v6  ;;  %v564_v11 = vld [vmem:[%s663_s0 + $0x28] sm:$0xff]   ;;  %v565_v13 = vld [vmem:[%s663_s0 + $0x30] sm:$0xff]   ;;  %v562_v14 = vld [vmem:[%s663_s0 + $0x18] sm:$0xff]  }
   0x6   :  { %v566_v15 = vld [vmem:[%s663_s0 + $0x38] sm:$0xff]  }
   0x7   :  { %506 = vmatpush3.bf16.msra.mxu0 %v552_v1  ;;  %544 = vmatpush3.bf16.msra.mxu1 %v552_v1 }
   0x8   :  { %507 = vmatprep.subr.bf16.mxu0 %v553_v2  ;;  %537 = vmatprep.subr.bf16.mxu1 %v553_v2 }
   0xb   :  { %508 = vmatpush3.bf16.msra.mxu0 %v553_v2  ;;  %545 = vmatpush3.bf16.msra.mxu1 %v553_v2 }
   0xc   :  { %509 = vmatprep.subr.bf16.mxu0 %v554_v3  ;;  %538 = vmatprep.subr.bf16.mxu1 %v554_v3 }
   0xf   :  { %510 = vmatpush3.bf16.msra.mxu0 %v554_v3  ;;  %546 = vmatpush3.bf16.msra.mxu1 %v554_v3 }
  0x10   :  { %511 = vmatprep.subr.bf16.mxu0 %v555_v5  ;;  %539 = vmatprep.subr.bf16.mxu1 %v555_v5 }
  0x13   :  { %512 = vmatpush3.bf16.msra.mxu0 %v555_v5  ;;  %547 = vmatpush3.bf16.msra.mxu1 %v555_v5 }
  0x14   :  { %513 = vmatprep.subr.bf16.mxu0 %v556_v7  ;;  %540 = vmatprep.subr.bf16.mxu1 %v556_v7 }
  0x17   :  { %514 = vmatpush3.bf16.msra.mxu0 %v556_v7  ;;  %548 = vmatpush3.bf16.msra.mxu1 %v556_v7 }
  0x18   :  { %515 = vmatprep.subr.bf16.mxu0 %v557_v8  ;;  %541 = vmatprep.subr.bf16.mxu1 %v557_v8 }
  0x1b   :  { %516 = vmatpush3.bf16.msra.mxu0 %v557_v8  ;;  %549 = vmatpush3.bf16.msra.mxu1 %v557_v8 }
  0x1c   :  { %517 = vmatprep.subr.bf16.mxu0 %v558_v9  ;;  %542 = vmatprep.subr.bf16.mxu1 %v558_v9 }
  0x1f   :  { %518 = vmatpush3.bf16.msra.mxu0 %v558_v9  ;;  %550 = vmatpush3.bf16.msra.mxu1 %v558_v9 }
  0x22   :  { %520 = vmatmul.mubr.bf16.vlgmr.msra.gmra.mrb[0].mxu0 %v560_v10  ;;  %528 = vmatmul.mubr.bf16.vlgmr.msra.gmra.mrb[0].mxu1 %v564_v11 }
  0x23   :  { %523 = vmatprep.mubr.bf16.mxu0 %v561_v12  ;;  %531 = vmatprep.mubr.bf16.mxu1 %v565_v13 }
  0x2a   :  { %524 = vmatmul.mubr.bf16.gmra.mrb[4].mxu0 %v562_v14  ;;  %532 = vmatmul.mubr.bf16.gmra.mrb[4].mxu1 %v566_v15 }
  0xf5   :  { %v521_v16 = vpop.f32.mrb[0].mxu0  ;;  %v529_v17 = vpop.f32.mrb[0].mxu1 }
  0xf6   :  { %v176_v18 = vpop.f32.mrb[1].mxu0  ;;  %v208_v19 = vpop.f32.mrb[1].mxu1  ;;  %v342_v31 = vmul.f32 %v521_v16, %v521_v16  ;;  %v350_v3 = vmul.f32 %v529_v17, %v529_v17 }
  0xf7   :  { %v522_v20 = vpop.f32.mrb[2].mxu0  ;;  %v530_v21 = vpop.f32.mrb[2].mxu1  ;;  %v340_v22 = vmul.f32 %v176_v18, %v176_v18  ;;  %v348_v61 = vmul.f32 %v208_v19, %v208_v19 }
  0xf8   :  { %v448_v23 = vpack.c.bf16 %v522_v20, %v521_v16  ;;  %v179_v24 = vpop.f32.mrb[3].mxu0  ;;  %v468_v25 = vpack.c.bf16 %v530_v21, %v529_v17  ;;  %v211_v26 = vpop.f32.mrb[3].mxu1  ;;  %v343_v34 = vmul.f32 %v522_v20, %v522_v20  ;;  %v351_v6 = vmul.f32 %v530_v21, %v530_v21 }
  0xf9   :  { %v443_v27 = vpack.c.bf16 %v179_v24, %v176_v18  ;;  %v319_v28 = vadd.f32 %v179_v24, %v176_v18  ;;  %v341_v29 = vmul.f32 %v179_v24, %v179_v24  ;;  %v463_v30 = vpack.c.bf16 %v211_v26, %v208_v19 }
  0xfa   :  { %480 = vst [vmem:[%s664_s2 + $0x8] sm:$0xff] %v448_v23   ;;  %484 = vst [vmem:[%s664_s2 + $0x28] sm:$0xff] %v468_v25   ;;  %v349_v2 = vmul.f32 %v211_v26, %v211_v26 }
  0xfb   :  { %444 = vst [vmem:[%s664_s2] sm:$0xff] %v443_v27   ;;  %v320_v32 = vadd.f32 %v521_v16, %v319_v28  ;;  %v356_v33 = vadd.f32 %v341_v29, %v340_v22  ;;  %483 = vst [vmem:[%s664_s2 + $0x20] sm:$0xff] %v463_v30  }
  0xfd   :  { %v357_v35 = vadd.f32 %v356_v33, %v342_v31  ;;  %v525_v36 = vpop.f32.mrb[4].mxu0  ;;  %v321_v37 = vadd.f32 %v522_v20, %v320_v32  ;;  %v533_v38 = vpop.f32.mrb[4].mxu1 }
  0xfe   :  { %v192_v39 = vpop.f32.mrb[5].mxu0  ;;  %v224_v40 = vpop.f32.mrb[5].mxu1  ;;  %v346_v55 = vmul.f32 %v525_v36, %v525_v36  ;;  %v354_v15 = vmul.f32 %v533_v38, %v533_v38 }
  0xff   :  { %v322_v41 = vadd.f32 %v321_v37, %v192_v39  ;;  %v344_v42 = vmul.f32 %v192_v39, %v192_v39  ;;  %v358_v43 = vadd.f32 %v357_v35, %v343_v34  ;;  %v526_v44 = vpop.f32.mrb[6].mxu0  ;;  %v534_v45 = vpop.f32.mrb[6].mxu1  ;;  %v352_v9 = vmul.f32 %v224_v40, %v224_v40 }
 0x100   :  { %v458_v46 = vpack.c.bf16 %v526_v44, %v525_v36  ;;  %v195_v47 = vpop.f32.mrb[7].mxu0  ;;  %v478_v48 = vpack.c.bf16 %v534_v45, %v533_v38  ;;  %v227_v49 = vpop.f32.mrb[7].mxu1  ;;  %v347_v58 = vmul.f32 %v526_v44, %v526_v44 }
 0x101   :  { %v359_v50 = vadd.f32 %v358_v43, %v344_v42  ;;  %v453_v51 = vpack.c.bf16 %v195_v47, %v192_v39  ;;  %v323_v52 = vadd.f32 %v322_v41, %v195_v47  ;;  %v345_v53 = vmul.f32 %v195_v47, %v195_v47 }
 0x102   :  { %482 = vst [vmem:[%s664_s2 + $0x18] sm:$0xff] %v458_v46   ;;  %486 = vst [vmem:[%s664_s2 + $0x38] sm:$0xff] %v478_v48   ;;  %v473_v54 = vpack.c.bf16 %v227_v49, %v224_v40  ;;  %v353_v14 = vmul.f32 %v227_v49, %v227_v49 }
 0x103   :  { %481 = vst [vmem:[%s664_s2 + $0x10] sm:$0xff] %v453_v51   ;;  %v324_v56 = vadd.f32 %v525_v36, %v323_v52  ;;  %v360_v57 = vadd.f32 %v359_v50, %v345_v53 }
 0x104   :  { %485 = vst [vmem:[%s664_s2 + $0x30] sm:$0xff] %v473_v54  }
 0x105   :  { %v361_v59 = vadd.f32 %v360_v57, %v346_v55  ;;  %v325_v60 = vadd.f32 %v526_v44, %v324_v56 }
 0x107   :  { %v326_v62 = vadd.f32 %v325_v60, %v208_v19  ;;  %v362_v63 = vadd.f32 %v361_v59, %v347_v58  ;;  %v355_v19 = vmul.f32 %v534_v45, %v534_v45 }
 0x109   :  { %v363_v0 = vadd.f32 %v362_v63, %v348_v61  ;;  %v327_v1 = vadd.f32 %v326_v62, %v211_v26  ;;  %v377_v26 = vlaneseq }
 0x10b   :  { %v328_v4 = vadd.f32 %v529_v17, %v327_v1  ;;  %v364_v5 = vadd.f32 %v363_v0, %v349_v2  ;;  %v378_v30 = vshrl.u32 %v377_v26, 7 }
 0x10d   :  { %v365_v7 = vadd.f32 %v364_v5, %v350_v3  ;;  %v329_v8 = vadd.f32 %v530_v21, %v328_v4  ;;  %vm380_vm0 = vcmp.eq.s32.totalorder %v378_v30, 1  ;;  %vm379_vm1 = vcmp.eq.s32.totalorder %v378_v30, 0 }
 0x10f   :  { %v330_v10 = vadd.f32 %v329_v8, %v224_v40  ;;  %v366_v11 = vadd.f32 %v365_v7, %v351_v6 }
 0x111   :  { %v367_v12 = vadd.f32 %v366_v11, %v352_v9  ;;  %v331_v13 = vadd.f32 %v330_v10, %v227_v49 }
 0x113   :  { %v332_v16 = vadd.f32 %v533_v38, %v331_v13  ;;  %v368_v18 = vadd.f32 %v367_v12, %v353_v14 }
 0x115   :  { %v333_v20 = vadd.f32 %v534_v45, %v332_v16  ;;  %v369_v22 = vadd.f32 %v368_v18, %v354_v15 }
 0x117   :  { %v334_v23 = vrot.slane %v333_v20, 4  ;;  %v370_v24 = vadd.f32 %v369_v22, %v355_v19 }
 0x119   :  { %v335_v25 = vadd.f32 %v334_v23, %v333_v20  ;;  %v371_v17 = vrot.slane %v370_v24, 4 }
 0x11b   :  { %v336_v27 = vrot.slane %v335_v25, 2  ;;  %v372_v28 = vadd.f32 %v371_v17, %v370_v24 }
 0x11d   :  { %v337_v21 = vadd.f32 %v336_v27, %v335_v25  ;;  %v373_v29 = vrot.slane %v372_v28, 2 }
 0x11f   :  { %v374_v31 = vadd.f32 %v373_v29, %v372_v28  ;;  %v338_v32 = vrot.slane %v337_v21, 1 }
 0x121   :  { %v375_v33 = vrot.slane %v374_v31, 1  ;;  %v339_v35 = vadd.f32 %v338_v32, %v337_v21 }
 0x123   :  { %v376_v34 = vadd.f32 %v375_v33, %v374_v31 }
 0x125   :  { %v381_v36 = vsel %vm380_vm0, %v376_v34, 0.0 }
 0x126   :  { %v382_v37 = vsel %vm379_vm1, %v339_v35, %v381_v36 }
 0x127   :  { %383 = vst [vmem:[%s665_s3] sm:$0xff] %v382_v37 }

// kernel: residual_forward.7
= control target key start
LH: loop header
LB: loop body
LE: loop exit
PB: predicated region body
PF: predicated region fallthrough
CT: control target
= control target key end

     0   :  { %s824_s4 = inlined_call_operand.vmem [shape: bf16[128,128], index: 4, kind: input, shape index: {}]   ;;  %s825_s3 = inlined_call_operand.vmem [shape: bf16[128,128], index: 3, kind: input, shape index: {}]   ;;  %s826_s0 = inlined_call_operand.vmem [shape: bf16[128,128], index: 0, kind: input, shape index: {}]   ;;  %s827_s1 = inlined_call_operand.vmem [shape: f32[1,128], index: 1, kind: input, shape index: {}]   ;;  %s828_s2 = inlined_call_operand.vmem [shape: f32[1,128], index: 2, kind: input, shape index: {}]   ;;  %s829_s5 = inlined_call_operand.vmem [shape: bf16[128,128], index: 5, kind: output, shape index: {}]  }
   0x1   :  { %v640_v0 = vld [vmem:[%s824_s4] sm:$0xff]   ;;  %v641_v1 = vld [vmem:[%s824_s4 + $0x8] sm:$0xff]   ;;  %v642_v2 = vld [vmem:[%s824_s4 + $0x10] sm:$0xff]  }
   0x2   :  { %592 = vmatprep.subr.bf16.mxu0 %v640_v0  ;;  %624 = vmatprep.subr.bf16.mxu1 %v640_v0  ;;  %v643_v3 = vld [vmem:[%s824_s4 + $0x18] sm:$0xff]   ;;  %v648_v4 = vld [vmem:[%s825_s3] sm:$0xff]   ;;  %v645_v7 = vld [vmem:[%s824_s4 + $0x28] sm:$0xff]  }
   0x3   :  { %593 = vmatpush3.bf16.msra.mxu0 %v640_v0  ;;  %632 = vmatpush3.bf16.msra.mxu1 %v640_v0  ;;  %v649_v5 = vld [vmem:[%s825_s3 + $0x20] sm:$0xff]   ;;  %v646_v8 = vld [vmem:[%s824_s4 + $0x30] sm:$0xff]   ;;  %v647_v9 = vld [vmem:[%s824_s4 + $0x38] sm:$0xff]  }
   0x4   :  { %594 = vmatprep.subr.bf16.mxu0 %v641_v1  ;;  %625 = vmatprep.subr.bf16.mxu1 %v641_v1  ;;  %v644_v6 = vld [vmem:[%s824_s4 + $0x20] sm:$0xff]   ;;  %v650_v10 = vld [vmem:[%s825_s3 + $0x8] sm:$0xff]   ;;  %v652_v12 = vld [vmem:[%s825_s3 + $0x10] sm:$0xff]  }
   0x5   :  { %608 = vmatprep.mubr.bf16.mxu0 %v648_v4  ;;  %616 = vmatprep.mubr.bf16.mxu1 %v649_v5  ;;  %v651_v11 = vld [vmem:[%s825_s3 + $0x28] sm:$0xff]   ;;  %v653_v13 = vld [vmem:[%s825_s3 + $0x30] sm:$0xff]   ;;  %v654_v14 = vld [vmem:[%s825_s3 + $0x18] sm:$0xff]  }
   0x6   :  { %v655_v15 = vld [vmem:[%s825_s3 + $0x38] sm:$0xff]   ;;  %v562_v16 = vld [vmem:[%s826_s0 + $0x8] sm:$0xff]   ;;  %v491_v18 = vld [vmem:[%s826_s0] sm:$0xff]  }
   0x7   :  { %595 = vmatpush3.bf16.msra.mxu0 %v641_v1  ;;  %633 = vmatpush3.bf16.msra.mxu1 %v641_v1  ;;  %v566_v17 = vld [vmem:[%s826_s0 + $0x28] sm:$0xff]   ;;  %v565_v19 = vld [vmem:[%s826_s0 + $0x20] sm:$0xff]   ;;  %v496_v20 = vunpack.c.l.bf16 %v562_v16  ;;  %v492_v23 = vunpack.c.l.bf16 %v491_v18  ;;  %v564_v25 = vld [vmem:[%s826_s0 + $0x18] sm:$0xff]   ;;  %v497_v27 = vunpack.c.h.bf16 %v562_v16  ;;  %v493_v29 = vunpack.c.h.bf16 %v491_v18 }
   0x8   :  { %596 = vmatprep.subr.bf16.mxu0 %v642_v2  ;;  %626 = vmatprep.subr.bf16.mxu1 %v642_v2  ;;  %v512_v21 = vunpack.c.l.bf16 %v566_v17  ;;  %v749_v22 = vld [vmem:[%s827_s1] ss:$0 sm:$0xff]  ;;  %v508_v24 = vunpack.c.l.bf16 %v565_v19  ;;  %v568_v26 = vld [vmem:[%s826_s0 + $0x38] sm:$0xff]   ;;  %v513_v28 = vunpack.c.h.bf16 %v566_v17  ;;  %v509_v30 = vunpack.c.h.bf16 %v565_v19  ;;  %v563_v31 = vld [vmem:[%s826_s0 + $0x10] sm:$0xff]  }
   0x9   :  { %v567_v32 = vld [vmem:[%s826_s0 + $0x30] sm:$0xff]   ;;  %v62_v33 = vmul.f32 %v496_v20, %v749_v22  ;;  %v504_v35 = vunpack.c.l.bf16 %v564_v25  ;;  %v520_v36 = vunpack.c.l.bf16 %v568_v26  ;;  %v768_v37 = vld [vmem:[%s828_s2] ss:$0 sm:$0xff]  ;;  %v60_v38 = vmul.f32 %v492_v23, %v749_v22 }
   0xa   :  { %v70_v34 = vmul.f32 %v512_v21, %v749_v22  ;;  %v68_v39 = vmul.f32 %v508_v24, %v749_v22  ;;  %v63_v40 = vmul.f32 %v497_v27, %v749_v22  ;;  %v71_v41 = vmul.f32 %v513_v28, %v749_v22 }
   0xb   :  { %597 = vmatpush3.bf16.msra.mxu0 %v642_v2  ;;  %634 = vmatpush3.bf16.msra.mxu1 %v642_v2  ;;  %v500_v42 = vunpack.c.l.bf16 %v563_v31  ;;  %v516_v43 = vunpack.c.l.bf16 %v567_v32  ;;  %v61_v44 = vmul.f32 %v493_v29, %v749_v22  ;;  %v69_v45 = vmul.f32 %v509_v30, %v749_v22 }
   0xc   :  { %598 = vmatprep.subr.bf16.mxu0 %v643_v3  ;;  %627 = vmatprep.subr.bf16.mxu1 %v643_v3  ;;  %v85_v46 = vadd.f32 %v768_v37, %v62_v33  ;;  %v93_v47 = vadd.f32 %v768_v37, %v70_v34  ;;  %v66_v48 = vmul.f32 %v504_v35, %v749_v22  ;;  %v505_v52 = vunpack.c.h.bf16 %v564_v25 }
   0xd   :  { %v74_v49 = vmul.f32 %v520_v36, %v749_v22  ;;  %v83_v50 = vadd.f32 %v768_v37, %v60_v38  ;;  %v91_v51 = vadd.f32 %v768_v37, %v68_v39  ;;  %v521_v53 = vunpack.c.h.bf16 %v568_v26 }
   0xe   :  { %v86_v54 = vadd.f32 %v768_v37, %v63_v40  ;;  %v94_v55 = vadd.f32 %v768_v37, %v71_v41  ;;  %v64_v56 = vmul.f32 %v500_v42, %v749_v22  ;;  %v72_v57 = vmul.f32 %v516_v43, %v749_v22 }
   0xf   :  { %599 = vmatpush3.bf16.msra.mxu0 %v643_v3  ;;  %635 = vmatpush3.bf16.msra.mxu1 %v643_v3  ;;  %v84_v60 = vadd.f32 %v768_v37, %v61_v44  ;;  %v92_v61 = vadd.f32 %v768_v37, %v69_v45  ;;  %v501_v62 = vunpack.c.h.bf16 %v563_v31  ;;  %v517_v63 = vunpack.c.h.bf16 %v567_v32 }
  0x10   :  { %600 = vmatprep.subr.bf16.mxu0 %v644_v6  ;;  %628 = vmatprep.subr.bf16.mxu1 %v644_v6  ;;  %v89_v4 = vadd.f32 %v768_v37, %v66_v48  ;;  %v97_v5 = vadd.f32 %v768_v37, %v74_v49  ;;  %v87_v16 = vadd.f32 %v768_v37, %v64_v56 }
  0x11   :  { %v95_v17 = vadd.f32 %v768_v37, %v72_v57  ;;  %v65_v20 = vmul.f32 %v501_v62, %v749_v22  ;;  %v73_v21 = vmul.f32 %v517_v63, %v749_v22 }
  0x13   :  { %601 = vmatpush3.bf16.msra.mxu0 %v644_v6  ;;  %636 = vmatpush3.bf16.msra.mxu1 %v644_v6  ;;  %v96_v40 = vadd.f32 %v768_v37, %v73_v21 }
  0x14   :  { %602 = vmatprep.subr.bf16.mxu0 %v645_v7  ;;  %629 = vmatprep.subr.bf16.mxu1 %v645_v7 }
  0x17   :  { %603 = vmatpush3.bf16.msra.mxu0 %v645_v7  ;;  %637 = vmatpush3.bf16.msra.mxu1 %v645_v7 }
  0x18   :  { %604 = vmatprep.subr.bf16.mxu0 %v646_v8  ;;  %630 = vmatprep.subr.bf16.mxu1 %v646_v8 }
  0x1b   :  { %605 = vmatpush3.bf16.msra.mxu0 %v646_v8  ;;  %638 = vmatpush3.bf16.msra.mxu1 %v646_v8 }
  0x1c   :  { %606 = vmatprep.subr.bf16.mxu0 %v647_v9  ;;  %631 = vmatprep.subr.bf16.mxu1 %v647_v9 }
  0x1f   :  { %607 = vmatpush3.bf16.msra.mxu0 %v647_v9  ;;  %639 = vmatpush3.bf16.msra.mxu1 %v647_v9 }
  0x22   :  { %609 = vmatmul.mubr.bf16.vlgmr.msra.gmra.mrb[0].mxu0 %v650_v10  ;;  %617 = vmatmul.mubr.bf16.vlgmr.msra.gmra.mrb[0].mxu1 %v651_v11  ;;  %v67_v10 = vmul.f32 %v505_v52, %v749_v22  ;;  %v75_v11 = vmul.f32 %v521_v53, %v749_v22  ;;  %v88_v22 = vadd.f32 %v768_v37, %v65_v20 }
  0x23   :  { %612 = vmatprep.mubr.bf16.mxu0 %v652_v12  ;;  %620 = vmatprep.mubr.bf16.mxu1 %v653_v13 }
  0x24   :  { %v90_v33 = vadd.f32 %v768_v37, %v67_v10  ;;  %v98_v34 = vadd.f32 %v768_v37, %v75_v11 }
  0x2a   :  { %613 = vmatmul.mubr.bf16.gmra.mrb[4].mxu0 %v654_v14  ;;  %621 = vmatmul.mubr.bf16.gmra.mrb[4].mxu1 %v655_v15 }
  0xf5   :  { %v610_v58 = vpop.f32.mrb[0].mxu0  ;;  %v618_v59 = vpop.f32.mrb[0].mxu1 }
  0xf6   :  { %v326_v0 = vadd.f32 %v610_v58, %v85_v46  ;;  %v334_v1 = vadd.f32 %v618_v59, %v93_v47  ;;  %v261_v2 = vpop.f32.mrb[1].mxu0  ;;  %v293_v3 = vpop.f32.mrb[1].mxu1 }
  0xf7   :  { %v324_v6 = vadd.f32 %v261_v2, %v83_v50  ;;  %v332_v7 = vadd.f32 %v293_v3, %v91_v51  ;;  %v611_v8 = vpop.f32.mrb[2].mxu0  ;;  %v619_v9 = vpop.f32.mrb[2].mxu1 }
  0xf8   :  { %v327_v12 = vadd.f32 %v611_v8, %v86_v54  ;;  %v335_v13 = vadd.f32 %v619_v9, %v94_v55  ;;  %v264_v14 = vpop.f32.mrb[3].mxu0  ;;  %v296_v15 = vpop.f32.mrb[3].mxu1  ;;  %v342_v23 = vmax.f32 %v326_v0, 0.0  ;;  %v350_v24 = vmax.f32 %v334_v1, 0.0 }
  0xf9   :  { %v325_v18 = vadd.f32 %v264_v14, %v84_v60  ;;  %v333_v19 = vadd.f32 %v296_v15, %v92_v61  ;;  %v340_v27 = vmax.f32 %v324_v6, 0.0  ;;  %v348_v28 = vmax.f32 %v332_v7, 0.0 }
  0xfa   :  { %v343_v25 = vmax.f32 %v327_v12, 0.0  ;;  %v351_v26 = vmax.f32 %v335_v13, 0.0 }
  0xfb   :  { %v341_v29 = vmax.f32 %v325_v18, 0.0  ;;  %v349_v30 = vmax.f32 %v333_v19, 0.0 }
  0xfc   :  { %v530_v31 = vpack.c.bf16 %v343_v25, %v342_v23  ;;  %v550_v32 = vpack.c.bf16 %v351_v26, %v350_v24 }
  0xfd   :  { %v525_v35 = vpack.c.bf16 %v341_v29, %v340_v27  ;;  %v545_v36 = vpack.c.bf16 %v349_v30, %v348_v28  ;;  %v614_v38 = vpop.f32.mrb[4].mxu0  ;;  %v622_v39 = vpop.f32.mrb[4].mxu1 }
  0xfe   :  { %569 = vst [vmem:[%s829_s5 + $0x8] sm:$0xff] %v530_v31   ;;  %573 = vst [vmem:[%s829_s5 + $0x28] sm:$0xff] %v550_v32   ;;  %v330_v41 = vadd.f32 %v614_v38, %v89_v4  ;;  %v338_v42 = vadd.f32 %v622_v39, %v97_v5  ;;  %v277_v43 = vpop.f32.mrb[5].mxu0  ;;  %v309_v44 = vpop.f32.mrb[5].mxu1 }
  0xff   :  { %526 = vst [vmem:[%s829_s5] sm:$0xff] %v525_v35   ;;  %572 = vst [vmem:[%s829_s5 + $0x20] sm:$0xff] %v545_v36   ;;  %v328_v37 = vadd.f32 %v277_v43, %v87_v16  ;;  %v336_v45 = vadd.f32 %v309_v44, %v95_v17  ;;  %v615_v46 = vpop.f32.mrb[6].mxu0  ;;  %v623_v47 = vpop.f32.mrb[6].mxu1 }
 0x100   :  { %v331_v48 = vadd.f32 %v615_v46, %v90_v33  ;;  %v339_v49 = vadd.f32 %v623_v47, %v98_v34  ;;  %v280_v50 = vpop.f32.mrb[7].mxu0  ;;  %v312_v51 = vpop.f32.mrb[7].mxu1  ;;  %v346_v54 = vmax.f32 %v330_v41, 0.0  ;;  %v354_v55 = vmax.f32 %v338_v42, 0.0 }
 0x101   :  { %v329_v52 = vadd.f32 %v280_v50, %v88_v22  ;;  %v337_v53 = vadd.f32 %v312_v51, %v96_v40  ;;  %v344_v58 = vmax.f32 %v328_v37, 0.0  ;;  %v352_v59 = vmax.f32 %v336_v45, 0.0 }
 0x102   :  { %v347_v56 = vmax.f32 %v331_v48, 0.0  ;;  %v355_v57 = vmax.f32 %v339_v49, 0.0 }
 0x103   :  { %v345_v60 = vmax.f32 %v329_v52, 0.0  ;;  %v353_v61 = vmax.f32 %v337_v53, 0.0 }
 0x104   :  { %v540_v62 = vpack.c.bf16 %v347_v56, %v346_v54  ;;  %v560_v63 = vpack.c.bf16 %v355_v57, %v354_v55 }
 0x105   :  { %v535_v0 = vpack.c.bf16 %v345_v60, %v344_v58  ;;  %v555_v1 = vpack.c.bf16 %v353_v61, %v352_v59 }
 0x106   :  { %571 = vst [vmem:[%s829_s5 + $0x18] sm:$0xff] %v540_v62   ;;  %575 = vst [vmem:[%s829_s5 + $0x38] sm:$0xff] %v560_v63  }
 0x107   :  { %570 = vst [vmem:[%s829_s5 + $0x10] sm:$0xff] %v535_v0   ;;  %574 = vst [vmem:[%s829_s5 + $0x30] sm:$0xff] %v555_v1  }

</bundles_post_ra>
